<compile_context>
chip_gen: v6e
topology: v6e:2x2x1
jax: 0.10.0
libtpu: 0.0.40
codegen_flags: <defaults>
</compile_context>

<pallas_src>
import math
import numpy as np
import jax
import jax.numpy as jnp
from jax import lax
from jax.experimental import pallas as pl
from jax.experimental.pallas import tpu as pltpu


def _cdiv(a, b):
    return -(-a // b)


def _round_up(x, m):
    return _cdiv(x, m) * m


def _tensorcores_per_chip():
    """2 for dual-TensorCore chips (v7x); 1 for v5e/v6e (and as a safe default)."""
    try:
        kind = jax.devices()[0].device_kind.lower()
    except Exception:
        return 1
    return 2 if ("v7" in kind or "7x" in kind) else 1


def _pool_heights(L):
    """Heights after each DPCNN pooling block (the `while h >= 2` cascade)."""
    hs = []
    h = L - 2
    while h >= 2:
        h = (h + 1 - 3) // 2 + 1   # padding2 (one zero row) + MaxPool2d((3,1), stride=2)
        hs.append(h)
    return hs


def _lane_mask(bt, L, h):
    """(1, bt*L) f32: 1 on the first h rows of every length-L segment."""
    r = np.arange(bt * L) % L
    return jnp.asarray((r < h).astype(np.float32)[None, :])


def _decim_matrix(bt, L, ho):
    """(bt*L, bt*L) 0/1 right-selector: out lane b*L+i <- in lane b*L+2i (i < ho)."""
    n = bt * L
    R = np.zeros((n, n), np.float32)
    for b in range(bt):
        for i in range(ho):
            R[b * L + 2 * i, b * L + i] = 1.0
    return jnp.asarray(R)


def _final_select(bt, L):
    """(bt*L, bt) selector picking row 0 of every segment (the final squeeze)."""
    R = np.zeros((bt * L, bt), np.float32)
    R[np.arange(bt) * L, np.arange(bt)] = 1.0
    return jnp.asarray(R)


def _make_kernel(Bt, L, V, n_pool):
    def kernel(*refs):
        (tok_ref, tab_ref, wr_ref, br_ref, wc_ref, bc_ref,
         wfc_ref, bfc_ref) = refs[:8]
        mask_refs = refs[8:9 + n_pool]
        sel_refs = refs[9 + n_pool:-1]
        out_ref = refs[-1]

        f32 = jnp.float32
        N = Bt * L

        def roll_l(x, k):   # lane n <- x[:, n + k]  (wrapped lanes are masked later)
            return pltpu.roll(x, x.shape[1] - k, axis=1)

        def roll_r(x, k):   # lane n <- x[:, n - k]
            return pltpu.roll(x, k, axis=1)

        # ---- embedding: one-hot matmul against the VMEM-resident (E, V) table ----
        # TODO(synk): the fused one-hot lookup is toy-vocab-only; for a realistic
        # vocabulary gather rows outside the kernel or via scalar-prefetch DMA.
        tok = tok_ref[...]                                            # (1, N) int32
        ids = lax.broadcasted_iota(jnp.int32, (V, N), 0)
        onehot = (ids == tok).astype(f32)                             # (V, N)
        emb = jnp.dot(tab_ref[...], onehot, preferred_element_type=f32)  # (E, N)

        wc = wc_ref[...]                                              # (F, 3F)
        bc = bc_ref[...]                                              # (F, 1)

        def conv_pad_relu(x, mask):
            # ZeroPad2d((0,0,1,1)) -> ReLU -> Conv2d(F, F, (3,1)) in lane-dense form.
            r = jnp.maximum(x, 0.0)
            a = jnp.concatenate([roll_r(r, 1), r, roll_l(r, 1)], axis=0)   # (3F, N)
            y = jnp.dot(wc, a, preferred_element_type=f32) + bc
            return y * mask   # re-zero invalid tail rows / wrapped lanes

        # ---- conv_region: Conv2d(1, F, (3, E)), valid conv, im2col'd ----
        m0 = mask_refs[0][...]                                        # (1, N)
        a0 = jnp.concatenate([emb, roll_l(emb, 1), roll_l(emb, 2)], axis=0)  # (3E, N)
        x = (jnp.dot(wr_ref[...], a0, preferred_element_type=f32) + br_ref[...]) * m0

        x = conv_pad_relu(x, m0)
        x = conv_pad_relu(x, m0)

        # ---- DPCNN blocks (static shapes -> fully unrolled at trace time) ----
        for t in range(n_pool):
            # padding2 + MaxPool2d((3,1), stride=2): rolling window-3 max, then
            # stride-2 decimation expressed as a selector matmul (MXU is idle).
            mx = jnp.maximum(jnp.maximum(x, roll_l(x, 1)), roll_l(x, 2))
            px = jnp.dot(mx, sel_refs[t][...], preferred_element_type=f32)
            msk = mask_refs[t + 1][...]
            y = conv_pad_relu(px, msk)
            y = conv_pad_relu(y, msk)
            x = y + px

        # ---- squeeze (single valid row per segment) + Linear ----
        xf = jnp.dot(x, sel_refs[n_pool][...], preferred_element_type=f32)   # (F, Bt)
        out_ref[...] = (jnp.dot(xf.T, wfc_ref[...], preferred_element_type=f32)
                        + bfc_ref[...])
    return kernel


def dpcnn_forward(tokens, emb_table, w_region_pt, b_region_pt, w_conv_pt,
                  b_conv_pt, w_fc_pt, b_fc_pt, *, max_block_batch=32):
    """DPCNN forward.  tokens: (B, L) int; weights given in PyTorch layouts."""
    B, L = tokens.shape
    V, E = emb_table.shape
    F = w_conv_pt.shape[0]
    C = w_fc_pt.shape[0]
    assert L >= 3

    # --- per-generation grid sizing: serial grid on v5e/v6e, 2 TCs on v7x ---
    n_tc = _tensorcores_per_chip()
    grid_n = max(_cdiv(B, max_block_batch), 1)
    if n_tc > 1:
        grid_n = max(grid_n, min(B, n_tc))

    if grid_n == 1:
        Bt = B                         # full-array blocks satisfy the layout rules
    else:
        lane_need = 128 // math.gcd(L, 128)
        mult = (8 * lane_need) // math.gcd(8, lane_need)   # lcm(8, lane_need)
        Bt = _round_up(_cdiv(B, grid_n), mult)             # equal, 8-aligned blocks
    B_pad = grid_n * Bt

    tok = tokens.astype(jnp.int32)
    if B_pad != B:
        pad = jnp.full((B_pad - B, L), V - 1, jnp.int32)   # padding_idx rows
        tok = jnp.concatenate([tok, pad], axis=0)
    tok_lanes = tok.reshape(1, B_pad * L)

    # --- weights in lane-dense / im2col layouts (host-side plumbing) ---
    tab_t = emb_table.T                                      # (E, V)
    w_region = w_region_pt[:, 0].reshape(F, 3 * E)           # (F, 3E), tap-major cols
    w_conv = jnp.transpose(w_conv_pt[:, :, :, 0], (0, 2, 1)).reshape(F, 3 * F)
    b_region = b_region_pt.reshape(F, 1)
    b_conv = b_conv_pt.reshape(F, 1)
    w_fc = w_fc_pt.T                                         # (F, C)
    b_fc = b_fc_pt.reshape(1, C)

    hs = _pool_heights(L)
    n_pool = len(hs)
    final_h = hs[-1] if hs else L - 2
    assert final_h == 1, "DPCNN cascade must end at height 1"

    masks = [_lane_mask(Bt, L, L - 2)] + [_lane_mask(Bt, L, h) for h in hs]
    sels = [_decim_matrix(Bt, L, h) for h in hs] + [_final_select(Bt, L)]

    def const_spec(arr):
        return pl.BlockSpec(arr.shape, lambda g: (0, 0))

    in_specs = ([pl.BlockSpec((1, Bt * L), lambda g: (0, g))]
                + [const_spec(a) for a in (tab_t, w_region, b_region, w_conv,
                                           b_conv, w_fc, b_fc)]
                + [const_spec(a) for a in masks]
                + [const_spec(a) for a in sels])

    out = pl.pallas_call(
        _make_kernel(Bt, L, V, n_pool),
        out_shape=jax.ShapeDtypeStruct((B_pad, C), jnp.float32),
        grid=(grid_n,),
        in_specs=in_specs,
        out_specs=pl.BlockSpec((Bt, C), lambda g: (g, 0)),
        compiler_params=pltpu.CompilerParams(dimension_semantics=("parallel",)),
    )(tok_lanes, tab_t, w_region, b_region, w_conv, b_conv, w_fc, b_fc,
      *masks, *sels)
    return out[:B]


def _ref_forward(tokens, emb_table, w_region_pt, b_region_pt, w_conv_pt,
                 b_conv_pt, w_fc_pt, b_fc_pt):
    """Plain-JAX transcription of the PyTorch forward (independent reference)."""
    emb = jnp.take(emb_table, tokens, axis=0)            # (B, L, E)
    wr = w_region_pt[:, 0]                               # (F, 3, E)
    wc = w_conv_pt[:, :, :, 0]                           # (F, F, 3)

    def conv_region(x):                                  # (H, E) -> (H-2, F)
        h = x.shape[0] - 2
        rows = [jnp.einsum('ke,fke->f', x[i:i + 3], wr) + b_region_pt for i in range(h)]
        return jnp.stack(rows)

    def conv(x):                                         # (H, F) -> (H-2, F)
        h = x.shape[0] - 2
        rows = [jnp.einsum('kc,fck->f', x[i:i + 3], wc) + b_conv_pt for i in range(h)]
        return jnp.stack(rows)

    def pad1(x):
        return jnp.pad(x, ((1, 1), (0, 0)))

    def pad2(x):
        return jnp.pad(x, ((0, 1), (0, 0)))

    def maxpool(x):                                      # kernel 3, stride 2 along H
        ho = (x.shape[0] - 3) // 2 + 1
        return jnp.stack([jnp.max(x[2 * i:2 * i + 3], axis=0) for i in range(ho)])

    def single(e):
        x = conv_region(e)
        x = conv(jax.nn.relu(pad1(x)))
        x = conv(jax.nn.relu(pad1(x)))
        while x.shape[0] >= 2:
            px = maxpool(pad2(x))
            y = conv(jax.nn.relu(pad1(px)))
            y = conv(jax.nn.relu(pad1(y)))
            x = y + px
        return jnp.dot(x[0], w_fc_pt.T) + b_fc_pt

    return jax.vmap(single)(emb)


if __name__ == "__main__":
    # config: n_vocab=50, embed=32, num_filters=8, num_classes=4, seq_len=16
    B, L = 8, 16
    n_vocab, embed, num_filters, num_classes = 50, 32, 8, 4

    key = jax.random.PRNGKey(0)
    ks = jax.random.split(key, 8)

    emb_table = 0.1 * jax.random.normal(ks[0], (n_vocab, embed), jnp.float32)
    emb_table = emb_table.at[n_vocab - 1].set(0.0)       # padding_idx row is zero

    tokens = jax.random.randint(ks[1], (B, L), 0, n_vocab, jnp.int32)

    # Parameters in PyTorch layout.
    w_region_pt = 0.1 * jax.random.normal(ks[2], (num_filters, 1, 3, embed), jnp.float32)
    b_region_pt = 0.1 * jax.random.normal(ks[3], (num_filters,), jnp.float32)
    w_conv_pt = 0.1 * jax.random.normal(ks[4], (num_filters, num_filters, 3, 1), jnp.float32)
    b_conv_pt = 0.1 * jax.random.normal(ks[5], (num_filters,), jnp.float32)
    w_fc_pt = 0.1 * jax.random.normal(ks[6], (num_classes, num_filters), jnp.float32)
    b_fc_pt = 0.1 * jax.random.normal(ks[7], (num_classes,), jnp.float32)

    out = dpcnn_forward(tokens, emb_table, w_region_pt, b_region_pt,
                        w_conv_pt, b_conv_pt, w_fc_pt, b_fc_pt)
    out = jax.block_until_ready(out)

    ref = _ref_forward(tokens, emb_table, w_region_pt, b_region_pt,
                       w_conv_pt, b_conv_pt, w_fc_pt, b_fc_pt)
    assert out.shape == (B, num_classes)
    assert jnp.allclose(out, ref, atol=1e-2, rtol=1e-2), (out, ref)
    print("KERNEL_OK")
</pallas_src>

<mosaic_0001>
module attributes {stable_mosaic.version = 11 : i64} {
  func.func @kernel(%arg0: i32, %arg1: memref<1x128xi32, #tpu.memory_space<vmem>>, %arg2: memref<32x50xf32, #tpu.memory_space<vmem>>, %arg3: memref<8x96xf32, #tpu.memory_space<vmem>>, %arg4: memref<8x1xf32, #tpu.memory_space<vmem>>, %arg5: memref<8x24xf32, #tpu.memory_space<vmem>>, %arg6: memref<8x1xf32, #tpu.memory_space<vmem>>, %arg7: memref<8x4xf32, #tpu.memory_space<vmem>>, %arg8: memref<1x4xf32, #tpu.memory_space<vmem>>, %arg9: memref<1x128xf32, #tpu.memory_space<vmem>>, %arg10: memref<1x128xf32, #tpu.memory_space<vmem>>, %arg11: memref<1x128xf32, #tpu.memory_space<vmem>>, %arg12: memref<1x128xf32, #tpu.memory_space<vmem>>, %arg13: memref<128x128xf32, #tpu.memory_space<vmem>>, %arg14: memref<128x128xf32, #tpu.memory_space<vmem>>, %arg15: memref<128x128xf32, #tpu.memory_space<vmem>>, %arg16: memref<128x8xf32, #tpu.memory_space<vmem>>, %arg17: memref<8x4xf32, #tpu.memory_space<vmem>>) attributes {dimension_semantics = [#tpu.dimension_semantics<parallel>], iteration_bounds = array<i64: 1>, scalar_prefetch = 0 : i64, scratch_operands = 0 : i64, tpu.core_type = #tpu.core_type<tc>, window_params = [{transform_indices = @transform_0, window_bounds = array<i64: 1, 128>}, {pipeline_mode = #tpu.pipeline_mode<synchronous>, transform_indices = @transform_1, window_bounds = array<i64: 32, 50>}, {pipeline_mode = #tpu.pipeline_mode<synchronous>, transform_indices = @transform_2, window_bounds = array<i64: 8, 96>}, {pipeline_mode = #tpu.pipeline_mode<synchronous>, transform_indices = @transform_3, window_bounds = array<i64: 8, 1>}, {pipeline_mode = #tpu.pipeline_mode<synchronous>, transform_indices = @transform_4, window_bounds = array<i64: 8, 24>}, {pipeline_mode = #tpu.pipeline_mode<synchronous>, transform_indices = @transform_5, window_bounds = array<i64: 8, 1>}, {pipeline_mode = #tpu.pipeline_mode<synchronous>, transform_indices = @transform_6, window_bounds = array<i64: 8, 4>}, {pipeline_mode = #tpu.pipeline_mode<synchronous>, transform_indices = @transform_7, window_bounds = array<i64: 1, 4>}, {pipeline_mode = #tpu.pipeline_mode<synchronous>, transform_indices = @transform_8, window_bounds = array<i64: 1, 128>}, {pipeline_mode = #tpu.pipeline_mode<synchronous>, transform_indices = @transform_9, window_bounds = array<i64: 1, 128>}, {pipeline_mode = #tpu.pipeline_mode<synchronous>, transform_indices = @transform_10, window_bounds = array<i64: 1, 128>}, {pipeline_mode = #tpu.pipeline_mode<synchronous>, transform_indices = @transform_11, window_bounds = array<i64: 1, 128>}, {pipeline_mode = #tpu.pipeline_mode<synchronous>, transform_indices = @transform_12, window_bounds = array<i64: 128, 128>}, {pipeline_mode = #tpu.pipeline_mode<synchronous>, transform_indices = @transform_13, window_bounds = array<i64: 128, 128>}, {pipeline_mode = #tpu.pipeline_mode<synchronous>, transform_indices = @transform_14, window_bounds = array<i64: 128, 128>}, {pipeline_mode = #tpu.pipeline_mode<synchronous>, transform_indices = @transform_15, window_bounds = array<i64: 128, 8>}, {transform_indices = @transform_16, window_bounds = array<i64: 8, 4>}]} {
    %c0 = arith.constant 0 : index
    %c0_0 = arith.constant 0 : index
    %0 = vector.load %arg1[%c0, %c0_0] : memref<1x128xi32, #tpu.memory_space<vmem>>, vector<1x128xi32>
    %1 = tpu.iota {dimensions = array<i32: 0>} : vector<50x128xi32>
    %2 = vector.broadcast %0 : vector<1x128xi32> to vector<50x128xi32>
    %3 = arith.cmpi eq, %1, %2 : vector<50x128xi32>
    %4 = arith.extui %3 : vector<50x128xi1> to vector<50x128xi32>
    %5 = arith.sitofp %4 : vector<50x128xi32> to vector<50x128xf32>
    %c0_1 = arith.constant 0 : index
    %c0_2 = arith.constant 0 : index
    %6 = vector.load %arg2[%c0_1, %c0_2] : memref<32x50xf32, #tpu.memory_space<vmem>>, vector<32x50xf32>
    %cst = arith.constant dense<0.000000e+00> : vector<32x128xf32>
    %7 = tpu.matmul %6, %5, %cst {dimension_numbers = #tpu.dot_dimension_numbers<[1], [0], [0], [1], [0, 0, 1, 1], [], []>} : vector<32x50xf32>, vector<50x128xf32>, vector<32x128xf32> -> vector<32x128xf32>
    %c0_3 = arith.constant 0 : index
    %c0_4 = arith.constant 0 : index
    %8 = vector.load %arg5[%c0_3, %c0_4] : memref<8x24xf32, #tpu.memory_space<vmem>>, vector<8x24xf32>
    %c0_5 = arith.constant 0 : index
    %c0_6 = arith.constant 0 : index
    %9 = vector.load %arg6[%c0_5, %c0_6] : memref<8x1xf32, #tpu.memory_space<vmem>>, vector<8x1xf32>
    %c0_7 = arith.constant 0 : index
    %c0_8 = arith.constant 0 : index
    %10 = vector.load %arg9[%c0_7, %c0_8] : memref<1x128xf32, #tpu.memory_space<vmem>>, vector<1x128xf32>
    %c127_i32 = arith.constant 127 : i32
    %11 = tpu.dynamic_rotate %7 by %c127_i32 dim 1 : vector<32x128xf32>, i32 -> vector<32x128xf32>
    %c126_i32 = arith.constant 126 : i32
    %12 = tpu.dynamic_rotate %7 by %c126_i32 dim 1 : vector<32x128xf32>, i32 -> vector<32x128xf32>
    %13 = tpu.concatenate %7, %11, %12 in 0 : vector<32x128xf32>, vector<32x128xf32>, vector<32x128xf32> -> vector<96x128xf32>
    %c0_9 = arith.constant 0 : index
    %c0_10 = arith.constant 0 : index
    %14 = vector.load %arg3[%c0_9, %c0_10] : memref<8x96xf32, #tpu.memory_space<vmem>>, vector<8x96xf32>
    %cst_11 = arith.constant dense<0.000000e+00> : vector<8x128xf32>
    %15 = tpu.matmul %14, %13, %cst_11 {dimension_numbers = #tpu.dot_dimension_numbers<[1], [0], [0], [1], [0, 0, 1, 1], [], []>} : vector<8x96xf32>, vector<96x128xf32>, vector<8x128xf32> -> vector<8x128xf32>
    %c0_12 = arith.constant 0 : index
    %c0_13 = arith.constant 0 : index
    %16 = vector.load %arg4[%c0_12, %c0_13] : memref<8x1xf32, #tpu.memory_space<vmem>>, vector<8x1xf32>
    %17 = vector.broadcast %16 : vector<8x1xf32> to vector<8x128xf32>
    %18 = arith.addf %15, %17 : vector<8x128xf32>
    %19 = vector.broadcast %10 : vector<1x128xf32> to vector<8x128xf32>
    %20 = arith.mulf %18, %19 : vector<8x128xf32>
    %cst_14 = arith.constant 0.000000e+00 : f32
    %21 = vector.broadcast %cst_14 : f32 to vector<8x128xf32>
    %22 = arith.maximumf %20, %21 : vector<8x128xf32>
    %c1_i32 = arith.constant 1 : i32
    %23 = tpu.dynamic_rotate %22 by %c1_i32 dim 1 : vector<8x128xf32>, i32 -> vector<8x128xf32>
    %c127_i32_15 = arith.constant 127 : i32
    %24 = tpu.dynamic_rotate %22 by %c127_i32_15 dim 1 : vector<8x128xf32>, i32 -> vector<8x128xf32>
    %25 = tpu.concatenate %23, %22, %24 in 0 : vector<8x128xf32>, vector<8x128xf32>, vector<8x128xf32> -> vector<24x128xf32>
    %cst_16 = arith.constant dense<0.000000e+00> : vector<8x128xf32>
    %26 = tpu.matmul %8, %25, %cst_16 {dimension_numbers = #tpu.dot_dimension_numbers<[1], [0], [0], [1], [0, 0, 1, 1], [], []>} : vector<8x24xf32>, vector<24x128xf32>, vector<8x128xf32> -> vector<8x128xf32>
    %27 = vector.broadcast %9 : vector<8x1xf32> to vector<8x128xf32>
    %28 = arith.addf %26, %27 : vector<8x128xf32>
    %29 = vector.broadcast %10 : vector<1x128xf32> to vector<8x128xf32>
    %30 = arith.mulf %28, %29 : vector<8x128xf32>
    %cst_17 = arith.constant 0.000000e+00 : f32
    %31 = vector.broadcast %cst_17 : f32 to vector<8x128xf32>
    %32 = arith.maximumf %30, %31 : vector<8x128xf32>
    %c1_i32_18 = arith.constant 1 : i32
    %33 = tpu.dynamic_rotate %32 by %c1_i32_18 dim 1 : vector<8x128xf32>, i32 -> vector<8x128xf32>
    %c127_i32_19 = arith.constant 127 : i32
    %34 = tpu.dynamic_rotate %32 by %c127_i32_19 dim 1 : vector<8x128xf32>, i32 -> vector<8x128xf32>
    %35 = tpu.concatenate %33, %32, %34 in 0 : vector<8x128xf32>, vector<8x128xf32>, vector<8x128xf32> -> vector<24x128xf32>
    %cst_20 = arith.constant dense<0.000000e+00> : vector<8x128xf32>
    %36 = tpu.matmul %8, %35, %cst_20 {dimension_numbers = #tpu.dot_dimension_numbers<[1], [0], [0], [1], [0, 0, 1, 1], [], []>} : vector<8x24xf32>, vector<24x128xf32>, vector<8x128xf32> -> vector<8x128xf32>
    %37 = vector.broadcast %9 : vector<8x1xf32> to vector<8x128xf32>
    %38 = arith.addf %36, %37 : vector<8x128xf32>
    %39 = vector.broadcast %10 : vector<1x128xf32> to vector<8x128xf32>
    %40 = arith.mulf %38, %39 : vector<8x128xf32>
    %c127_i32_21 = arith.constant 127 : i32
    %41 = tpu.dynamic_rotate %40 by %c127_i32_21 dim 1 : vector<8x128xf32>, i32 -> vector<8x128xf32>
    %42 = arith.maximumf %40, %41 : vector<8x128xf32>
    %c126_i32_22 = arith.constant 126 : i32
    %43 = tpu.dynamic_rotate %40 by %c126_i32_22 dim 1 : vector<8x128xf32>, i32 -> vector<8x128xf32>
    %44 = arith.maximumf %42, %43 : vector<8x128xf32>
    %c0_23 = arith.constant 0 : index
    %c0_24 = arith.constant 0 : index
    %45 = vector.load %arg13[%c0_23, %c0_24] : memref<128x128xf32, #tpu.memory_space<vmem>>, vector<128x128xf32>
    %cst_25 = arith.constant dense<0.000000e+00> : vector<8x128xf32>
    %46 = tpu.matmul %44, %45, %cst_25 {dimension_numbers = #tpu.dot_dimension_numbers<[1], [0], [0], [1], [0, 0, 1, 1], [], []>} : vector<8x128xf32>, vector<128x128xf32>, vector<8x128xf32> -> vector<8x128xf32>
    %c0_26 = arith.constant 0 : index
    %c0_27 = arith.constant 0 : index
    %47 = vector.load %arg10[%c0_26, %c0_27] : memref<1x128xf32, #tpu.memory_space<vmem>>, vector<1x128xf32>
    %cst_28 = arith.constant 0.000000e+00 : f32
    %48 = vector.broadcast %cst_28 : f32 to vector<8x128xf32>
    %49 = arith.maximumf %46, %48 : vector<8x128xf32>
    %c1_i32_29 = arith.constant 1 : i32
    %50 = tpu.dynamic_rotate %49 by %c1_i32_29 dim 1 : vector<8x128xf32>, i32 -> vector<8x128xf32>
    %c127_i32_30 = arith.constant 127 : i32
    %51 = tpu.dynamic_rotate %49 by %c127_i32_30 dim 1 : vector<8x128xf32>, i32 -> vector<8x128xf32>
    %52 = tpu.concatenate %50, %49, %51 in 0 : vector<8x128xf32>, vector<8x128xf32>, vector<8x128xf32> -> vector<24x128xf32>
    %cst_31 = arith.constant dense<0.000000e+00> : vector<8x128xf32>
    %53 = tpu.matmul %8, %52, %cst_31 {dimension_numbers = #tpu.dot_dimension_numbers<[1], [0], [0], [1], [0, 0, 1, 1], [], []>} : vector<8x24xf32>, vector<24x128xf32>, vector<8x128xf32> -> vector<8x128xf32>
    %54 = vector.broadcast %9 : vector<8x1xf32> to vector<8x128xf32>
    %55 = arith.addf %53, %54 : vector<8x128xf32>
    %56 = vector.broadcast %47 : vector<1x128xf32> to vector<8x128xf32>
    %57 = arith.mulf %55, %56 : vector<8x128xf32>
    %cst_32 = arith.constant 0.000000e+00 : f32
    %58 = vector.broadcast %cst_32 : f32 to vector<8x128xf32>
    %59 = arith.maximumf %57, %58 : vector<8x128xf32>
    %c1_i32_33 = arith.constant 1 : i32
    %60 = tpu.dynamic_rotate %59 by %c1_i32_33 dim 1 : vector<8x128xf32>, i32 -> vector<8x128xf32>
    %c127_i32_34 = arith.constant 127 : i32
    %61 = tpu.dynamic_rotate %59 by %c127_i32_34 dim 1 : vector<8x128xf32>, i32 -> vector<8x128xf32>
    %62 = tpu.concatenate %60, %59, %61 in 0 : vector<8x128xf32>, vector<8x128xf32>, vector<8x128xf32> -> vector<24x128xf32>
    %cst_35 = arith.constant dense<0.000000e+00> : vector<8x128xf32>
    %63 = tpu.matmul %8, %62, %cst_35 {dimension_numbers = #tpu.dot_dimension_numbers<[1], [0], [0], [1], [0, 0, 1, 1], [], []>} : vector<8x24xf32>, vector<24x128xf32>, vector<8x128xf32> -> vector<8x128xf32>
    %64 = vector.broadcast %9 : vector<8x1xf32> to vector<8x128xf32>
    %65 = arith.addf %63, %64 : vector<8x128xf32>
    %66 = vector.broadcast %47 : vector<1x128xf32> to vector<8x128xf32>
    %67 = arith.mulf %65, %66 : vector<8x128xf32>
    %68 = arith.addf %67, %46 : vector<8x128xf32>
    %c127_i32_36 = arith.constant 127 : i32
    %69 = tpu.dynamic_rotate %68 by %c127_i32_36 dim 1 : vector<8x128xf32>, i32 -> vector<8x128xf32>
    %70 = arith.maximumf %68, %69 : vector<8x128xf32>
    %c126_i32_37 = arith.constant 126 : i32
    %71 = tpu.dynamic_rotate %68 by %c126_i32_37 dim 1 : vector<8x128xf32>, i32 -> vector<8x128xf32>
    %72 = arith.maximumf %70, %71 : vector<8x128xf32>
    %c0_38 = arith.constant 0 : index
    %c0_39 = arith.constant 0 : index
    %73 = vector.load %arg14[%c0_38, %c0_39] : memref<128x128xf32, #tpu.memory_space<vmem>>, vector<128x128xf32>
    %cst_40 = arith.constant dense<0.000000e+00> : vector<8x128xf32>
    %74 = tpu.matmul %72, %73, %cst_40 {dimension_numbers = #tpu.dot_dimension_numbers<[1], [0], [0], [1], [0, 0, 1, 1], [], []>} : vector<8x128xf32>, vector<128x128xf32>, vector<8x128xf32> -> vector<8x128xf32>
    %c0_41 = arith.constant 0 : index
    %c0_42 = arith.constant 0 : index
    %75 = vector.load %arg11[%c0_41, %c0_42] : memref<1x128xf32, #tpu.memory_space<vmem>>, vector<1x128xf32>
    %cst_43 = arith.constant 0.000000e+00 : f32
    %76 = vector.broadcast %cst_43 : f32 to vector<8x128xf32>
    %77 = arith.maximumf %74, %76 : vector<8x128xf32>
    %c1_i32_44 = arith.constant 1 : i32
    %78 = tpu.dynamic_rotate %77 by %c1_i32_44 dim 1 : vector<8x128xf32>, i32 -> vector<8x128xf32>
    %c127_i32_45 = arith.constant 127 : i32
    %79 = tpu.dynamic_rotate %77 by %c127_i32_45 dim 1 : vector<8x128xf32>, i32 -> vector<8x128xf32>
    %80 = tpu.concatenate %78, %77, %79 in 0 : vector<8x128xf32>, vector<8x128xf32>, vector<8x128xf32> -> vector<24x128xf32>
    %cst_46 = arith.constant dense<0.000000e+00> : vector<8x128xf32>
    %81 = tpu.matmul %8, %80, %cst_46 {dimension_numbers = #tpu.dot_dimension_numbers<[1], [0], [0], [1], [0, 0, 1, 1], [], []>} : vector<8x24xf32>, vector<24x128xf32>, vector<8x128xf32> -> vector<8x128xf32>
    %82 = vector.broadcast %9 : vector<8x1xf32> to vector<8x128xf32>
    %83 = arith.addf %81, %82 : vector<8x128xf32>
    %84 = vector.broadcast %75 : vector<1x128xf32> to vector<8x128xf32>
    %85 = arith.mulf %83, %84 : vector<8x128xf32>
    %cst_47 = arith.constant 0.000000e+00 : f32
    %86 = vector.broadcast %cst_47 : f32 to vector<8x128xf32>
    %87 = arith.maximumf %85, %86 : vector<8x128xf32>
    %c1_i32_48 = arith.constant 1 : i32
    %88 = tpu.dynamic_rotate %87 by %c1_i32_48 dim 1 : vector<8x128xf32>, i32 -> vector<8x128xf32>
    %c127_i32_49 = arith.constant 127 : i32
    %89 = tpu.dynamic_rotate %87 by %c127_i32_49 dim 1 : vector<8x128xf32>, i32 -> vector<8x128xf32>
    %90 = tpu.concatenate %88, %87, %89 in 0 : vector<8x128xf32>, vector<8x128xf32>, vector<8x128xf32> -> vector<24x128xf32>
    %cst_50 = arith.constant dense<0.000000e+00> : vector<8x128xf32>
    %91 = tpu.matmul %8, %90, %cst_50 {dimension_numbers = #tpu.dot_dimension_numbers<[1], [0], [0], [1], [0, 0, 1, 1], [], []>} : vector<8x24xf32>, vector<24x128xf32>, vector<8x128xf32> -> vector<8x128xf32>
    %92 = vector.broadcast %9 : vector<8x1xf32> to vector<8x128xf32>
    %93 = arith.addf %91, %92 : vector<8x128xf32>
    %94 = vector.broadcast %75 : vector<1x128xf32> to vector<8x128xf32>
    %95 = arith.mulf %93, %94 : vector<8x128xf32>
    %96 = arith.addf %95, %74 : vector<8x128xf32>
    %c127_i32_51 = arith.constant 127 : i32
    %97 = tpu.dynamic_rotate %96 by %c127_i32_51 dim 1 : vector<8x128xf32>, i32 -> vector<8x128xf32>
    %98 = arith.maximumf %96, %97 : vector<8x128xf32>
    %c126_i32_52 = arith.constant 126 : i32
    %99 = tpu.dynamic_rotate %96 by %c126_i32_52 dim 1 : vector<8x128xf32>, i32 -> vector<8x128xf32>
    %100 = arith.maximumf %98, %99 : vector<8x128xf32>
    %c0_53 = arith.constant 0 : index
    %c0_54 = arith.constant 0 : index
    %101 = vector.load %arg15[%c0_53, %c0_54] : memref<128x128xf32, #tpu.memory_space<vmem>>, vector<128x128xf32>
    %cst_55 = arith.constant dense<0.000000e+00> : vector<8x128xf32>
    %102 = tpu.matmul %100, %101, %cst_55 {dimension_numbers = #tpu.dot_dimension_numbers<[1], [0], [0], [1], [0, 0, 1, 1], [], []>} : vector<8x128xf32>, vector<128x128xf32>, vector<8x128xf32> -> vector<8x128xf32>
    %c0_56 = arith.constant 0 : index
    %c0_57 = arith.constant 0 : index
    %103 = vector.load %arg12[%c0_56, %c0_57] : memref<1x128xf32, #tpu.memory_space<vmem>>, vector<1x128xf32>
    %cst_58 = arith.constant 0.000000e+00 : f32
    %104 = vector.broadcast %cst_58 : f32 to vector<8x128xf32>
    %105 = arith.maximumf %102, %104 : vector<8x128xf32>
    %c1_i32_59 = arith.constant 1 : i32
    %106 = tpu.dynamic_rotate %105 by %c1_i32_59 dim 1 : vector<8x128xf32>, i32 -> vector<8x128xf32>
    %c127_i32_60 = arith.constant 127 : i32
    %107 = tpu.dynamic_rotate %105 by %c127_i32_60 dim 1 : vector<8x128xf32>, i32 -> vector<8x128xf32>
    %108 = tpu.concatenate %106, %105, %107 in 0 : vector<8x128xf32>, vector<8x128xf32>, vector<8x128xf32> -> vector<24x128xf32>
    %cst_61 = arith.constant dense<0.000000e+00> : vector<8x128xf32>
    %109 = tpu.matmul %8, %108, %cst_61 {dimension_numbers = #tpu.dot_dimension_numbers<[1], [0], [0], [1], [0, 0, 1, 1], [], []>} : vector<8x24xf32>, vector<24x128xf32>, vector<8x128xf32> -> vector<8x128xf32>
    %110 = vector.broadcast %9 : vector<8x1xf32> to vector<8x128xf32>
    %111 = arith.addf %109, %110 : vector<8x128xf32>
    %112 = vector.broadcast %103 : vector<1x128xf32> to vector<8x128xf32>
    %113 = arith.mulf %111, %112 : vector<8x128xf32>
    %cst_62 = arith.constant 0.000000e+00 : f32
    %114 = vector.broadcast %cst_62 : f32 to vector<8x128xf32>
    %115 = arith.maximumf %113, %114 : vector<8x128xf32>
    %c1_i32_63 = arith.constant 1 : i32
    %116 = tpu.dynamic_rotate %115 by %c1_i32_63 dim 1 : vector<8x128xf32>, i32 -> vector<8x128xf32>
    %c127_i32_64 = arith.constant 127 : i32
    %117 = tpu.dynamic_rotate %115 by %c127_i32_64 dim 1 : vector<8x128xf32>, i32 -> vector<8x128xf32>
    %118 = tpu.concatenate %116, %115, %117 in 0 : vector<8x128xf32>, vector<8x128xf32>, vector<8x128xf32> -> vector<24x128xf32>
    %cst_65 = arith.constant dense<0.000000e+00> : vector<8x128xf32>
    %119 = tpu.matmul %8, %118, %cst_65 {dimension_numbers = #tpu.dot_dimension_numbers<[1], [0], [0], [1], [0, 0, 1, 1], [], []>} : vector<8x24xf32>, vector<24x128xf32>, vector<8x128xf32> -> vector<8x128xf32>
    %120 = vector.broadcast %9 : vector<8x1xf32> to vector<8x128xf32>
    %121 = arith.addf %119, %120 : vector<8x128xf32>
    %122 = vector.broadcast %103 : vector<1x128xf32> to vector<8x128xf32>
    %123 = arith.mulf %121, %122 : vector<8x128xf32>
    %124 = arith.addf %123, %102 : vector<8x128xf32>
    %c0_66 = arith.constant 0 : index
    %c0_67 = arith.constant 0 : index
    %125 = vector.load %arg16[%c0_66, %c0_67] : memref<128x8xf32, #tpu.memory_space<vmem>>, vector<128x8xf32>
    %cst_68 = arith.constant dense<0.000000e+00> : vector<8x8xf32>
    %126 = tpu.matmul %124, %125, %cst_68 {dimension_numbers = #tpu.dot_dimension_numbers<[1], [0], [0], [1], [0, 0, 1, 1], [], []>} : vector<8x128xf32>, vector<128x8xf32>, vector<8x8xf32> -> vector<8x8xf32>
    %127 = tpu.transpose %126, [1, 0] : vector<8x8xf32> -> vector<8x8xf32>
    %c0_69 = arith.constant 0 : index
    %c0_70 = arith.constant 0 : index
    %128 = vector.load %arg7[%c0_69, %c0_70] : memref<8x4xf32, #tpu.memory_space<vmem>>, vector<8x4xf32>
    %cst_71 = arith.constant dense<0.000000e+00> : vector<8x4xf32>
    %129 = tpu.matmul %127, %128, %cst_71 {dimension_numbers = #tpu.dot_dimension_numbers<[1], [0], [0], [1], [0, 0, 1, 1], [], []>} : vector<8x8xf32>, vector<8x4xf32>, vector<8x4xf32> -> vector<8x4xf32>
    %c0_72 = arith.constant 0 : index
    %c0_73 = arith.constant 0 : index
    %130 = vector.load %arg8[%c0_72, %c0_73] : memref<1x4xf32, #tpu.memory_space<vmem>>, vector<1x4xf32>
    %131 = vector.broadcast %130 : vector<1x4xf32> to vector<8x4xf32>
    %132 = arith.addf %129, %131 : vector<8x4xf32>
    %c0_74 = arith.constant 0 : index
    %c0_75 = arith.constant 0 : index
    %133 = vector.load %arg17[%c0_74, %c0_75] : memref<8x4xf32, #tpu.memory_space<vmem>>, vector<8x4xf32>
    tpu.vector_store %arg17[%c0_74, %c0_75], %132 {strides = array<i32>} : memref<8x4xf32, #tpu.memory_space<vmem>>, vector<8x4xf32>,
    return
  }
  func.func @transform_0(%arg0: i32) -> (i32, i32) {
    %c0_i32 = arith.constant 0 : i32
    %c0_i32_0 = arith.constant 0 : i32
    return %c0_i32, %arg0 : i32, i32
  }
  func.func @transform_1(%arg0: i32) -> (i32, i32) {
    %c0_i32 = arith.constant 0 : i32
    %c0_i32_0 = arith.constant 0 : i32
    %c0_i32_1 = arith.constant 0 : i32
    return %c0_i32, %c0_i32_0 : i32, i32
  }
  func.func @transform_2(%arg0: i32) -> (i32, i32) {
    %c0_i32 = arith.constant 0 : i32
    %c0_i32_0 = arith.constant 0 : i32
    %c0_i32_1 = arith.constant 0 : i32
    return %c0_i32, %c0_i32_0 : i32, i32
  }
  func.func @transform_3(%arg0: i32) -> (i32, i32) {
    %c0_i32 = arith.constant 0 : i32
    %c0_i32_0 = arith.constant 0 : i32
    %c0_i32_1 = arith.constant 0 : i32
    return %c0_i32, %c0_i32_0 : i32, i32
  }
  func.func @transform_4(%arg0: i32) -> (i32, i32) {
    %c0_i32 = arith.constant 0 : i32
    %c0_i32_0 = arith.constant 0 : i32
    %c0_i32_1 = arith.constant 0 : i32
    return %c0_i32, %c0_i32_0 : i32, i32
  }
  func.func @transform_5(%arg0: i32) -> (i32, i32) {
    %c0_i32 = arith.constant 0 : i32
    %c0_i32_0 = arith.constant 0 : i32
    %c0_i32_1 = arith.constant 0 : i32
    return %c0_i32, %c0_i32_0 : i32, i32
  }
  func.func @transform_6(%arg0: i32) -> (i32, i32) {
    %c0_i32 = arith.constant 0 : i32
    %c0_i32_0 = arith.constant 0 : i32
    %c0_i32_1 = arith.constant 0 : i32
    return %c0_i32, %c0_i32_0 : i32, i32
  }
  func.func @transform_7(%arg0: i32) -> (i32, i32) {
    %c0_i32 = arith.constant 0 : i32
    %c0_i32_0 = arith.constant 0 : i32
    %c0_i32_1 = arith.constant 0 : i32
    return %c0_i32, %c0_i32_0 : i32, i32
  }
  func.func @transform_8(%arg0: i32) -> (i32, i32) {
    %c0_i32 = arith.constant 0 : i32
    %c0_i32_0 = arith.constant 0 : i32
    %c0_i32_1 = arith.constant 0 : i32
    return %c0_i32, %c0_i32_0 : i32, i32
  }
  func.func @transform_9(%arg0: i32) -> (i32, i32) {
    %c0_i32 = arith.constant 0 : i32
    %c0_i32_0 = arith.constant 0 : i32
    %c0_i32_1 = arith.constant 0 : i32
    return %c0_i32, %c0_i32_0 : i32, i32
  }
  func.func @transform_10(%arg0: i32) -> (i32, i32) {
    %c0_i32 = arith.constant 0 : i32
    %c0_i32_0 = arith.constant 0 : i32
    %c0_i32_1 = arith.constant 0 : i32
    return %c0_i32, %c0_i32_0 : i32, i32
  }
  func.func @transform_11(%arg0: i32) -> (i32, i32) {
    %c0_i32 = arith.constant 0 : i32
    %c0_i32_0 = arith.constant 0 : i32
    %c0_i32_1 = arith.constant 0 : i32
    return %c0_i32, %c0_i32_0 : i32, i32
  }
  func.func @transform_12(%arg0: i32) -> (i32, i32) {
    %c0_i32 = arith.constant 0 : i32
    %c0_i32_0 = arith.constant 0 : i32
    %c0_i32_1 = arith.constant 0 : i32
    return %c0_i32, %c0_i32_0 : i32, i32
  }
  func.func @transform_13(%arg0: i32) -> (i32, i32) {
    %c0_i32 = arith.constant 0 : i32
    %c0_i32_0 = arith.constant 0 : i32
    %c0_i32_1 = arith.constant 0 : i32
    return %c0_i32, %c0_i32_0 : i32, i32
  }
  func.func @transform_14(%arg0: i32) -> (i32, i32) {
    %c0_i32 = arith.constant 0 : i32
    %c0_i32_0 = arith.constant 0 : i32
    %c0_i32_1 = arith.constant 0 : i32
    return %c0_i32, %c0_i32_0 : i32, i32
  }
  func.func @transform_15(%arg0: i32) -> (i32, i32) {
    %c0_i32 = arith.constant 0 : i32
    %c0_i32_0 = arith.constant 0 : i32
    %c0_i32_1 = arith.constant 0 : i32
    return %c0_i32, %c0_i32_0 : i32, i32
  }
  func.func @transform_16(%arg0: i32) -> (i32, i32) {
    %c0_i32 = arith.constant 0 : i32
    %c0_i32_0 = arith.constant 0 : i32
    return %arg0, %c0_i32 : i32, i32
  }
}

</mosaic_0001>

<bundles_post_ra>
// kernel: tpu_custom_call.1
= control target key start
LH: loop header
LB: loop body
LE: loop exit
PB: predicated region body
PF: predicated region fallthrough
CT: control target
= control target key end

     0   :  { %s2433_s0 = inlined_call_operand.vmem [shape: s32[1,128], index: 0, kind: input, shape index: {}]   ;;  %s2434_s1 = inlined_call_operand.vmem [shape: f32[32,50], index: 1, kind: input, shape index: {}]   ;;  %s2435_s2 = inlined_call_operand.vmem [shape: f32[8,96], index: 2, kind: input, shape index: {}]   ;;  %s2436_s3 = inlined_call_operand.vmem [shape: f32[8,1], index: 3, kind: input, shape index: {}]   ;;  %s2437_s4 = inlined_call_operand.vmem [shape: f32[8,24], index: 4, kind: input, shape index: {}]   ;;  %s2438_s5 = inlined_call_operand.vmem [shape: f32[8,1], index: 5, kind: input, shape index: {}]   ;;  %s2439_s6 = inlined_call_operand.vmem [shape: f32[8,4], index: 6, kind: input, shape index: {}]   ;;  %s2440_s7 = inlined_call_operand.vmem [shape: f32[1,4], index: 7, kind: input, shape index: {}]   ;;  %s2441_s8 = inlined_call_operand.vmem [shape: f32[1,128], index: 8, kind: input, shape index: {}]   ;;  %s2442_s9 = inlined_call_operand.vmem [shape: f32[1,128], index: 9, kind: input, shape index: {}]   ;;  %s2443_s10 = inlined_call_operand.vmem [shape: f32[1,128], index: 10, kind: input, shape index: {}]   ;;  %s2444_s11 = inlined_call_operand.hbm [shape: f32[1,128], index: 11, kind: input, shape index: {}]   ;;  %s2445_s12 = inlined_call_operand.vmem [shape: f32[128,128], index: 12, kind: input, shape index: {}]   ;;  %s2446_s13 = inlined_call_operand.hbm [shape: f32[128,128], index: 13, kind: input, shape index: {}]   ;;  %s2447_s14 = inlined_call_operand.hbm [shape: f32[128,128], index: 14, kind: input, shape index: {}]   ;;  %s2448_s15 = inlined_call_operand.vmem [shape: f32[128,8], index: 15, kind: input, shape index: {}]   ;;  %s2449_s16 = inlined_call_operand.vmem [shape: f32[8,4], index: 16, kind: output, shape index: {}]  }
   0x1   :  { %2450 = sst [smem:[#allocation9_spill]] %s2433_s0 }
   0x2   :  { %21 = vsyncpa [#allocation3], 0 }
   0x3   :  { %22 = vsyncpa [#allocation5], 0  ;;  %s1965_s21 = smov [#allocation4]  }
   0x4   :  { %s62_s22 = sshll.u32 %s1965_s21, 4  ;;  %s63_s22 = int_to_ptr.vmem [resolvable:$true] %s62_s22 }
   0x5   :  { %s1909_s23 = scalar_lea.vmem %s63_s22, 2048  ;;  %p1914_p1 = scmp.lt.s32.totalorder %s63_s22, %s63_s22 }
   0x6   :  { %p1910_p0 = scmp.ne.s32.totalorder %s63_s22, %s1909_s23  ;;  %p1915_p2 = scmp.lt.s32.totalorder %s1909_s23, %s1909_s23 }
   0x8   :  { %p1916_p3 = por %p1915_p2, %p1914_p1 }
   0xa   :  { %p1917_p4 = pnand %p1916_p3, %p1910_p0 }
   0xc   :  { %1920 = shalt.err (!%p1917_p4)
}
   0xd   :  { %s1966_s24 = smov 128   ;;  %s1967_s25 = smov 8  }
   0xe   :  { %68 = dma.hbm_to_vmem [thread:$0]  %s2446_s13, 2048, %s63_s22, [#allocation5], %s1966_s24, %s1966_s24, %s1967_s25  }
   0xf   :  { %s1968_s28 = smov [#allocation2]   ;;  %s1969_s30 = smov [#allocation6]  }
  0x10   :  { %s51_s29 = sshll.u32 %s1968_s28, 4  ;;  %s74_s0 = sshll.u32 %s1969_s30, 4  ;;  %s52_s29 = int_to_ptr.vmem [resolvable:$true] %s51_s29  ;;  %s75_s0 = int_to_ptr.vmem [resolvable:$true] %s74_s0 }
  0x11   :  { %s1929_s17 = scalar_lea.vmem %s52_s29, 16  ;;  %s1933_s18 = scalar_lea.vmem %s52_s29, 32 }
  0x12   :  { %p1930_p5 = scmp.ne.s32.totalorder %s52_s29, %s1929_s17  ;;  %p1934_p6 = scmp.lt.s32.totalorder %s52_s29, %s52_s29 }
  0x13   :  { %p1935_p7 = scmp.lt.s32.totalorder %s1933_s18, %s1929_s17 }
  0x15   :  { %p1936_p8 = por %p1935_p7, %p1934_p6 }
  0x17   :  { %p1937_p9 = pnand %p1936_p8, %p1930_p5 }
  0x19   :  { %1940 = shalt.err (!%p1937_p9)
}
  0x1a   :  { %54 = dma.hbm_to_vmem [thread:$0]  %s2444_s11, 16, %s52_s29, [#allocation3]  }
  0x1b   :  { %s1949_s21 = scalar_lea.vmem %s75_s0, 2048  ;;  %p1954_p11 = scmp.lt.s32.totalorder %s75_s0, %s75_s0 }
  0x1c   :  { %p1950_p10 = scmp.ne.s32.totalorder %s75_s0, %s1949_s21  ;;  %p1955_p12 = scmp.lt.s32.totalorder %s1949_s21, %s1949_s21 }
  0x1e   :  { %p1956_p13 = por %p1955_p12, %p1954_p11 }
  0x20   :  { %p1957_p0 = pnand %p1956_p13, %p1950_p10 }
  0x22   :  { %1960 = shalt.err (!%p1957_p0)
}
  0x23   :  { %80 = dma.hbm_to_vmem [thread:$0]  %s2447_s14, 2048, %s75_s0, [#allocation5], %s1966_s24, %s1966_s24, %s1967_s25  }
  0x24   :  { %1961 = dma.done.wait [#allocation3], 16  }
  0x25   :  { %1962 = vsyncadd [#allocation3], 4294967280 }
  0x26   :  { %1963 = dma.done.wait [#allocation5], 4096  }
  0x27   :  { %1964 = vsyncadd [#allocation5], 4294963200  ;;  %v93_v0 = vlaneseq  ;;  %v1970_v1 = vmov 0.0   ;;  %vm130_vm0 = vcmask 408576   ;;  %s2451_s26 = sld [smem:[#allocation9_spill]]  ;;  %vm143_vm1 = vcmask 1041408  }
  0x28   :  { %1644 = vmatprep.subr.mxu1 %v1970_v1  ;;  %v126_v7 = vld [vmem:[%s2434_s1] sm:$0xff]  ;;  %v1971_v11 = vmov 1.0   ;;  %v127_v13 = vld [vmem:[%s2434_s1 + $0x8] sm:$0xff]  ;;  %v128_v14 = vld [vmem:[%s2434_s1 + $0x10] sm:$0xff]  ;;  %s1972_s17 = smov 126   ;;  %s1973_s18 = smov 127  }
  0x29   :  { %v94_v2 = vshrl.u32 %v93_v0, 7  ;;  %1638 = vmatprep.mubr.msk.f32.mxu0 %vm130_vm0, %v126_v7  ;;  %v129_v15 = vld [vmem:[%s2434_s1 + $0x18] sm:$0xff]  ;;  %vm1974_vm9 = vmmov 0   ;;  %v1975_v20 = vmov 0   ;;  %v252_v21 = vld [vmem:[%s2436_s3] sm:$0xff]  ;;  %vm258_vm10 = vcmask 785408  }
  0x2a   :  { %1668 = vmatprep.mubr.msk.f32.mxu1 %vm1974_vm9, %v1970_v1  ;;  %1900 = vset.pattern.permute.xlu0 %v1975_v20  ;;  %v233_v22 = vld [vmem:[%s2438_s5] sm:$0xff]  ;;  %vm349_vm11 = vcmask 195584   ;;  %v521_v50 = vld [vmem:[%s2445_s12 + $0x78] sm:$0xff]  ;;  %v520_v51 = vld [vmem:[%s2445_s12 + $0x70] sm:$0xff]  ;;  %vm1382_vm12 = vcmask 64512   ;;  %vm1456_vm13 = vcmask 31744  }
  0x2b   :  { %v100_v3 = vadd.s32 48, %v94_v2  ;;  %v99_v4 = vadd.s32 40, %v94_v2  ;;  %v98_v6 = vadd.s32 32, %v94_v2  ;;  %v97_v9 = vadd.s32 24, %v94_v2  ;;  %v251_v31 = vld [vmem:[%s2435_s2] sm:$0xff]  ;;  %s1976_s2 = smov 1  }
  0x2c   :  { %v96_v10 = vadd.s32 16, %v94_v2  ;;  %v95_v12 = vadd.s32 8, %v94_v2  ;;  %v2131_v33 = vld [vmem:[%s2441_s8] ss:$0 sm:$0xff]  ;;  %v519_v52 = vld [vmem:[%s2445_s12 + $0x68] sm:$0xff]  ;;  %v517_v54 = vld [vmem:[%s2445_s12 + $0x58] sm:$0xff] }
  0x2d   :  { %v1464_v5 = vld [vmem:[%s2451_s26] ss:$0 sm:$0xff]  ;;  %v516_v55 = vld [vmem:[%s2445_s12 + $0x50] sm:$0xff]  ;;  %v515_v56 = vld [vmem:[%s2445_s12 + $0x48] sm:$0xff] }
  0x2e   :  { %vm111_vm2 = vcmp.eq.s32.totalorder %v100_v3, %v1464_v5  ;;  %vm110_vm3 = vcmp.eq.s32.totalorder %v99_v4, %v1464_v5  ;;  %vm109_vm4 = vcmp.eq.s32.totalorder %v98_v6, %v1464_v5  ;;  %vm108_vm5 = vcmp.eq.s32.totalorder %v97_v9, %v1464_v5  ;;  %v2140_v40 = vld [vmem:[%s2437_s4] sm:$0xff]  ;;  %v513_v58 = vld [vmem:[%s2445_s12 + $0x38] sm:$0xff]  ;;  %v512_v59 = vld [vmem:[%s2445_s12 + $0x30] sm:$0xff] }
  0x2f   :  { %v1471_v8 = vsel %vm111_vm2, 1.0, %v1970_v1  ;;  %vm107_vm6 = vcmp.eq.s32.totalorder %v96_v10, %v1464_v5  ;;  %vm106_vm7 = vcmp.eq.s32.totalorder %v95_v12, %v1464_v5  ;;  %vm105_vm8 = vcmp.eq.s32.totalorder %v94_v2, %v1464_v5  ;;  %v518_v53 = vld [vmem:[%s2445_s12 + $0x60] sm:$0xff]  ;;  %v511_v60 = vld [vmem:[%s2445_s12 + $0x28] sm:$0xff]  ;;  %v509_v62 = vld [vmem:[%s2445_s12 + $0x18] sm:$0xff] }
  0x30   :  { %1624 = vmatprep.subr.msk.mxu0 %vm143_vm1, %v1471_v8  ;;  %v514_v57 = vld [vmem:[%s2445_s12 + $0x40] sm:$0xff]  ;;  %v508_v63 = vld [vmem:[%s2445_s12 + $0x10] sm:$0xff]  ;;  %v507_v0 = vld [vmem:[%s2445_s12 + $0x8] sm:$0xff] }
  0x31   :  { %1625 = vmatpush3.msk.msra.mxu0 %vm143_vm1, %v1471_v8  ;;  %v510_v61 = vld [vmem:[%s2445_s12 + $0x20] sm:$0xff] }
  0x32   :  { %1626 = vmatprep.subr.msk.mxu0 %vm110_vm3, %v1971_v11  ;;  %v506_v2 = vld [vmem:[%s2445_s12] sm:$0xff] }
  0x33   :  { %1627 = vmatpush3.msk.msra.mxu0 %vm110_vm3, %v1971_v11 }
  0x34   :  { %1628 = vmatprep.subr.msk.mxu0 %vm109_vm4, %v1971_v11 }
  0x35   :  { %1629 = vmatpush3.msk.msra.mxu0 %vm109_vm4, %v1971_v11 }
  0x36   :  { %1630 = vmatprep.subr.msk.mxu0 %vm108_vm5, %v1971_v11 }
  0x37   :  { %1631 = vmatpush3.msk.msra.mxu0 %vm108_vm5, %v1971_v11 }
  0x38   :  { %1632 = vmatprep.subr.msk.mxu0 %vm107_vm6, %v1971_v11 }
  0x39   :  { %1633 = vmatpush3.msk.msra.mxu0 %vm107_vm6, %v1971_v11 }
  0x3a   :  { %1634 = vmatprep.subr.msk.mxu0 %vm106_vm7, %v1971_v11 }
  0x3b   :  { %1635 = vmatpush3.msk.msra.mxu0 %vm106_vm7, %v1971_v11 }
  0x3c   :  { %1636 = vmatprep.subr.msk.mxu0 %vm105_vm8, %v1971_v11 }
  0x3d   :  { %1637 = vmatpush3.msk.msra.mxu0 %vm105_vm8, %v1971_v11 }
  0x3e   :  { %1639 = vmatmul.mubr.msk.f32.vlgmr.msra.gmra.mxu0 %vm130_vm0, %v127_v13  ;;  %1680 = vmatprep.subr.mxu0 %v1970_v1 }
  0x3f   :  { %1641 = vmatprep.mubr.msk.f32.mxu0 %vm130_vm0, %v128_v14 }
  0x42   :  { %1642 = vmatmul.mubr.msk.f32.gmra.mxu0 %vm130_vm0, %v129_v15 }
  0x43   :  { %1686 = vmatprep.mubr.msk.f32.mxu0 %vm1974_vm9, %v1970_v1 }
  0xfe   :  { %v1640_v16 = vpop.f32.mrf.mxu0 }
  0xff   :  { %245 = vrot.lane.b32.xlu1 %v1640_v16, %s1972_s17 }
 0x100   :  { %v213_v17 = vpop.f32.mrf.mxu0 }
 0x102   :  { %v1643_v18 = vpop.f32.mrf.mxu0 }
 0x103   :  { %243 = vrot.lane.b32.xlu1 %v213_v17, %s1972_s17  ;;  %249 = vrot.lane.b32.xlu0 %v1643_v18, %s1972_s17 }
 0x104   :  { %v223_v19 = vpop.f32.mrf.mxu0 }
 0x107   :  { %239 = vrot.lane.b32.xlu1 %v223_v19, %s1973_s18  ;;  %247 = vrot.lane.b32.xlu0 %v223_v19, %s1972_s17 }
 0x10b   :  { %235 = vrot.lane.b32.xlu1 %v213_v17, %s1973_s18  ;;  %241 = vrot.lane.b32.xlu0 %v1643_v18, %s1973_s18 }
 0x10f   :  { %237 = vrot.lane.b32.xlu0 %v1640_v16, %s1973_s18 }
 0x113   :  { %255 = vperm.xlu0 %1900, %v252_v21  }
 0x117   :  { %346 = vperm.xlu0 %1900, %v233_v22  }
 0x171   :  { %v246_v23 = vpop.permute.xlu1 %245 }
 0x175   :  { %v250_v24 = vpop.permute.xlu0 %249  ;;  %v244_v25 = vpop.permute.xlu1 %243 }
 0x176   :  { %1645 = vmatpush3.msra.mxu1 %v250_v24  ;;  %v773_v24 = vld [vmem:[#allocation4 + $0x78] sm:$0xff] }
 0x177   :  { %1646 = vmatprep.subr.mxu1 %v1970_v1 }
 0x179   :  { %v248_v26 = vpop.permute.xlu0 %247  ;;  %v240_v28 = vpop.permute.xlu1 %239 }
 0x17a   :  { %1647 = vmatpush3.msra.mxu1 %v248_v26  ;;  %v771_v26 = vld [vmem:[#allocation4 + $0x68] sm:$0xff] }
 0x17b   :  { %1648 = vmatprep.subr.mxu1 %v1970_v1 }
 0x17c   :  { %1649 = vmatpush3.msra.mxu1 %v246_v23 }
 0x17d   :  { %1650 = vmatprep.subr.mxu1 %v1970_v1  ;;  %v242_v27 = vpop.permute.xlu0 %241  ;;  %v236_v30 = vpop.permute.xlu1 %235 }
 0x17e   :  { %1651 = vmatpush3.msra.mxu1 %v244_v25  ;;  %v772_v25 = vld [vmem:[#allocation4 + $0x70] sm:$0xff] }
 0x17f   :  { %1652 = vmatprep.subr.mxu1 %v1970_v1 }
 0x180   :  { %1653 = vmatpush3.msra.mxu1 %v242_v27  ;;  %v770_v27 = vld [vmem:[#allocation4 + $0x60] sm:$0xff] }
 0x181   :  { %1654 = vmatprep.subr.mxu1 %v1970_v1  ;;  %v238_v29 = vpop.permute.xlu0 %237 }
 0x182   :  { %1655 = vmatpush3.msra.mxu1 %v240_v28  ;;  %v769_v28 = vld [vmem:[#allocation4 + $0x58] sm:$0xff] }
 0x183   :  { %1656 = vmatprep.subr.mxu1 %v1970_v1 }
 0x184   :  { %1657 = vmatpush3.msra.mxu1 %v238_v29  ;;  %v768_v29 = vld [vmem:[#allocation4 + $0x50] sm:$0xff] }
 0x185   :  { %1658 = vmatprep.subr.mxu1 %v1970_v1 }
 0x186   :  { %1659 = vmatpush3.msra.mxu1 %v236_v30  ;;  %v767_v30 = vld [vmem:[#allocation4 + $0x48] sm:$0xff] }
 0x187   :  { %1660 = vmatprep.subr.mxu1 %v1970_v1 }
 0x188   :  { %1661 = vmatpush3.msra.mxu1 %v1643_v18 }
 0x189   :  { %1662 = vmatprep.subr.mxu1 %v1970_v1 }
 0x18a   :  { %1663 = vmatpush3.msra.mxu1 %v223_v19 }
 0x18b   :  { %1664 = vmatprep.subr.mxu1 %v1970_v1 }
 0x18c   :  { %1665 = vmatpush3.msra.mxu1 %v1640_v16  ;;  %v2246_v16 = vld [vmem:[%s2442_s9] ss:$0 sm:$0xff] }
 0x18d   :  { %1666 = vmatprep.subr.mxu1 %v1970_v1 }
 0x18e   :  { %1667 = vmatpush3.msra.mxu1 %v213_v17  ;;  %v256_v32 = vpop.permute.xlu0 %255 }
 0x18f   :  { %1669 = vmatmul.mubr.msk.f32.vlgmr.msra.gmra.mxu1 %vm258_vm10, %v251_v31  ;;  %1671 = vmatprep.subr.mxu1 %v1970_v1  ;;  %v766_v31 = vld [vmem:[#allocation4 + $0x40] sm:$0xff] }
 0x190   :  { %1677 = vmatprep.mubr.msk.f32.mxu1 %vm1974_vm9, %v1970_v1 }
 0x192   :  { %v2148_v42 = vpop.permute.xlu0 %346 }
 0x24f   :  { %v328_v34 = vpop.f32.mrf.mxu1 }
 0x250   :  { %v329_v35 = vadd.f32 %v328_v34, %v256_v32  ;;  %v765_v32 = vld [vmem:[#allocation4 + $0x38] sm:$0xff]  ;;  %v763_v34 = vld [vmem:[#allocation4 + $0x28] sm:$0xff] }
 0x251   :  { %v1670_v36 = vpop.f32.mrf.mxu1 }
 0x252   :  { %v338_v37 = vmul.f32 %v2131_v33, %v329_v35  ;;  %v762_v35 = vld [vmem:[#allocation4 + $0x20] sm:$0xff]  ;;  %v761_v36 = vld [vmem:[#allocation4 + $0x18] sm:$0xff] }
 0x254   :  { %v339_v38 = vmax.f32 %v338_v37, 0.0  ;;  %v760_v37 = vld [vmem:[#allocation4 + $0x10] sm:$0xff] }
 0x256   :  { %342 = vrot.lane.b32.xlu1 %v339_v38, %s1973_s18 }
 0x25a   :  { %340 = vrot.lane.b32.xlu1 %v339_v38, %s1976_s2 }
 0x2c8   :  { %v343_v39 = vpop.permute.xlu1 %342 }
 0x2c9   :  { %1672 = vmatpush3.msra.mxu1 %v343_v39  ;;  %v758_v39 = vld [vmem:[#allocation4] sm:$0xff] }
 0x2ca   :  { %1673 = vmatprep.subr.mxu1 %v1970_v1 }
 0x2cb   :  { %1674 = vmatpush3.msra.mxu1 %v339_v38  ;;  %v759_v38 = vld [vmem:[#allocation4 + $0x8] sm:$0xff] }
 0x2cc   :  { %1675 = vmatprep.subr.mxu1 %v1970_v1  ;;  %v341_v41 = vpop.permute.xlu1 %340 }
 0x2cd   :  { %1676 = vmatpush3.msra.mxu1 %v341_v41 }
 0x2ce   :  { %1678 = vmatmul.mubr.msk.f32.vlgmr.msra.gmra.mxu1 %vm349_vm11, %v2140_v40  ;;  %1689 = vmatprep.subr.mxu1 %v1970_v1 }
 0x2cf   :  { %1721 = vmatprep.mubr.msk.f32.mxu1 %vm1974_vm9, %v1970_v1  ;;  %1690 = vmatpush3.msra.mxu1 %v521_v50 }
 0x2d0   :  { %1691 = vmatprep.subr.mxu1 %v1970_v1 }
 0x2d1   :  { %1692 = vmatpush3.msra.mxu1 %v520_v51 }
 0x2d2   :  { %1693 = vmatprep.subr.mxu1 %v1970_v1 }
 0x2d3   :  { %1694 = vmatpush3.msra.mxu1 %v519_v52 }
 0x2d4   :  { %1695 = vmatprep.subr.mxu1 %v1970_v1 }
 0x2d5   :  { %1696 = vmatpush3.msra.mxu1 %v518_v53 }
 0x2d6   :  { %1697 = vmatprep.subr.mxu1 %v1970_v1 }
 0x2d7   :  { %1698 = vmatpush3.msra.mxu1 %v517_v54 }
 0x2d8   :  { %1699 = vmatprep.subr.mxu1 %v1970_v1 }
 0x2d9   :  { %1700 = vmatpush3.msra.mxu1 %v516_v55 }
 0x2da   :  { %1701 = vmatprep.subr.mxu1 %v1970_v1 }
 0x2db   :  { %1702 = vmatpush3.msra.mxu1 %v515_v56  ;;  %v2297_v56 = vld [vmem:[%s2443_s10] ss:$0 sm:$0xff] }
 0x2dc   :  { %1703 = vmatprep.subr.mxu1 %v1970_v1 }
 0x2dd   :  { %1704 = vmatpush3.msra.mxu1 %v514_v57 }
 0x2de   :  { %1705 = vmatprep.subr.mxu1 %v1970_v1 }
 0x2df   :  { %1706 = vmatpush3.msra.mxu1 %v513_v58 }
 0x2e0   :  { %1707 = vmatprep.subr.mxu1 %v1970_v1 }
 0x2e1   :  { %1708 = vmatpush3.msra.mxu1 %v512_v59 }
 0x2e2   :  { %1709 = vmatprep.subr.mxu1 %v1970_v1 }
 0x2e3   :  { %1710 = vmatpush3.msra.mxu1 %v511_v60 }
 0x2e4   :  { %1711 = vmatprep.subr.mxu1 %v1970_v1 }
 0x2e5   :  { %1712 = vmatpush3.msra.mxu1 %v510_v61 }
 0x2e6   :  { %1713 = vmatprep.subr.mxu1 %v1970_v1 }
 0x2e7   :  { %1714 = vmatpush3.msra.mxu1 %v509_v62 }
 0x2e8   :  { %1715 = vmatprep.subr.mxu1 %v1970_v1 }
 0x2e9   :  { %1716 = vmatpush3.msra.mxu1 %v508_v63 }
 0x2ea   :  { %1717 = vmatprep.subr.mxu1 %v1970_v1 }
 0x2eb   :  { %1718 = vmatpush3.msra.mxu1 %v507_v0  ;;  %v1025_v0 = vld [vmem:[#allocation6 + $0x78] sm:$0xff] }
 0x2ec   :  { %1719 = vmatprep.subr.mxu1 %v1970_v1 }
 0x2ed   :  { %1720 = vmatpush3.msra.mxu1 %v506_v2  ;;  %v1024_v2 = vld [vmem:[#allocation6 + $0x70] sm:$0xff] }
 0x2ee   :  { %1777 = vmatprep.subr.mxu1 %v1970_v1 }
 0x38e   :  { %v419_v43 = vpop.f32.mrf.mxu1 }
 0x38f   :  { %v420_v44 = vadd.f32 %v419_v43, %v2148_v42 }
 0x390   :  { %v1679_v45 = vpop.f32.mrf.mxu1 }
 0x391   :  { %v423_v46 = vmul.f32 %v2131_v33, %v420_v44 }
 0x393   :  { %v424_v47 = vmax.f32 %v423_v46, 0.0 }
 0x395   :  { %425 = vrot.lane.b32.xlu0 %v424_v47, %s1976_s2  ;;  %427 = vrot.lane.b32.xlu1 %v424_v47, %s1973_s18 }
 0x407   :  { %v428_v48 = vpop.permute.xlu1 %427  ;;  %v426_v49 = vpop.permute.xlu0 %425 }
 0x408   :  { %1681 = vmatpush3.msra.mxu0 %v428_v48 }
 0x409   :  { %1682 = vmatprep.subr.mxu0 %v1970_v1 }
 0x40a   :  { %1683 = vmatpush3.msra.mxu0 %v424_v47 }
 0x40b   :  { %1684 = vmatprep.subr.mxu0 %v1970_v1 }
 0x40c   :  { %1685 = vmatpush3.msra.mxu0 %v426_v49 }
 0x40d   :  { %1687 = vmatmul.mubr.msk.f32.vlgmr.msra.gmra.mxu0 %vm349_vm11, %v2140_v40  ;;  %1724 = vmatprep.subr.mxu0 %v1970_v1 }
 0x40e   :  { %1730 = vmatprep.mubr.msk.f32.mxu0 %vm1974_vm9, %v1970_v1 }
 0x4cd   :  { %v495_v3 = vpop.f32.mrf.mxu0 }
 0x4ce   :  { %v496_v4 = vadd.f32 %v495_v3, %v2148_v42  ;;  %v1023_v3 = vld [vmem:[#allocation6 + $0x68] sm:$0xff] }
 0x4cf   :  { %v1688_v5 = vpop.f32.mrf.mxu0 }
 0x4d0   :  { %v499_v6 = vmul.f32 %v2131_v33, %v496_v4  ;;  %v764_v33 = vld [vmem:[#allocation4 + $0x30] sm:$0xff]  ;;  %v1022_v4 = vld [vmem:[#allocation6 + $0x60] sm:$0xff]  ;;  %v1021_v5 = vld [vmem:[#allocation6 + $0x58] sm:$0xff] }
 0x4d2   :  { %503 = vrot.lane.b32.xlu0 %v499_v6, %s1972_s17  ;;  %500 = vrot.lane.b32.xlu1 %v499_v6, %s1973_s18 }
 0x544   :  { %v501_v7 = vpop.permute.xlu1 %500  ;;  %v504_v9 = vpop.permute.xlu0 %503 }
 0x545   :  { %v502_v8 = vmax.f32 %v499_v6, %v501_v7  ;;  %v1020_v6 = vld [vmem:[#allocation6 + $0x50] sm:$0xff]  ;;  %v1019_v7 = vld [vmem:[#allocation6 + $0x48] sm:$0xff] }
 0x547   :  { %v505_v10 = vmax.f32 %v502_v8, %v504_v9  ;;  %v1018_v8 = vld [vmem:[#allocation6 + $0x40] sm:$0xff]  ;;  %v1017_v9 = vld [vmem:[#allocation6 + $0x38] sm:$0xff] }
 0x549   :  { %1722 = vmatmul.mubr.f32.vlgmr.msra.gmra.mxu1 %v505_v10  ;;  %v1016_v10 = vld [vmem:[#allocation6 + $0x30] sm:$0xff] }
 0x54a   :  { %1783 = vmatprep.mubr.msk.f32.mxu1 %vm1974_vm9, %v1970_v1 }
 0x609   :  { %v2231_v11 = vpop.f32.mrf.mxu1 }
 0x60a   :  { %v593_v12 = vmax.f32 %v2231_v11, 0.0 }
 0x60b   :  { %v1723_v13 = vpop.f32.mrf.mxu1 }
 0x60c   :  { %594 = vrot.lane.b32.xlu0 %v593_v12, %s1976_s2  ;;  %596 = vrot.lane.b32.xlu1 %v593_v12, %s1973_s18  ;;  %v1013_v13 = vld [vmem:[#allocation6 + $0x18] sm:$0xff] }
 0x67e   :  { %v597_v14 = vpop.permute.xlu1 %596  ;;  %v595_v15 = vpop.permute.xlu0 %594 }
 0x67f   :  { %1725 = vmatpush3.msra.mxu0 %v597_v14  ;;  %v1012_v14 = vld [vmem:[#allocation6 + $0x10] sm:$0xff] }
 0x680   :  { %1726 = vmatprep.subr.mxu0 %v1970_v1 }
 0x681   :  { %1727 = vmatpush3.msra.mxu0 %v593_v12  ;;  %v1014_v12 = vld [vmem:[#allocation6 + $0x20] sm:$0xff] }
 0x682   :  { %1728 = vmatprep.subr.mxu0 %v1970_v1 }
 0x683   :  { %1729 = vmatpush3.msra.mxu0 %v595_v15  ;;  %v1011_v15 = vld [vmem:[#allocation6 + $0x8] sm:$0xff] }
 0x684   :  { %1731 = vmatmul.mubr.msk.f32.vlgmr.msra.gmra.mxu0 %vm349_vm11, %v2140_v40  ;;  %1733 = vmatprep.subr.mxu0 %v1970_v1 }
 0x685   :  { %1739 = vmatprep.mubr.msk.f32.mxu0 %vm1974_vm9, %v1970_v1 }
 0x744   :  { %v664_v17 = vpop.f32.mrf.mxu0 }
 0x745   :  { %v665_v18 = vadd.f32 %v664_v17, %v2148_v42 }
 0x746   :  { %v1732_v19 = vpop.f32.mrf.mxu0 }
 0x747   :  { %v674_v20 = vmul.f32 %v2246_v16, %v665_v18 }
 0x749   :  { %v675_v21 = vmax.f32 %v674_v20, 0.0 }
 0x74b   :  { %676 = vrot.lane.b32.xlu0 %v675_v21, %s1976_s2  ;;  %678 = vrot.lane.b32.xlu1 %v675_v21, %s1973_s18 }
 0x7bd   :  { %v679_v22 = vpop.permute.xlu1 %678  ;;  %v677_v23 = vpop.permute.xlu0 %676 }
 0x7be   :  { %1734 = vmatpush3.msra.mxu0 %v679_v22 }
 0x7bf   :  { %1735 = vmatprep.subr.mxu0 %v1970_v1 }
 0x7c0   :  { %1736 = vmatpush3.msra.mxu0 %v675_v21 }
 0x7c1   :  { %1737 = vmatprep.subr.mxu0 %v1970_v1 }
 0x7c2   :  { %1738 = vmatpush3.msra.mxu0 %v677_v23 }
 0x7c3   :  { %1740 = vmatmul.mubr.msk.f32.vlgmr.msra.gmra.mxu0 %vm349_vm11, %v2140_v40  ;;  %1742 = vmatprep.subr.mxu0 %v1970_v1 }
 0x7c4   :  { %1774 = vmatprep.mubr.msk.f32.mxu0 %vm1974_vm9, %v1970_v1  ;;  %1743 = vmatpush3.msra.mxu0 %v773_v24 }
 0x7c5   :  { %1744 = vmatprep.subr.mxu0 %v1970_v1 }
 0x7c6   :  { %1745 = vmatpush3.msra.mxu0 %v772_v25 }
 0x7c7   :  { %1746 = vmatprep.subr.mxu0 %v1970_v1 }
 0x7c8   :  { %1747 = vmatpush3.msra.mxu0 %v771_v26 }
 0x7c9   :  { %1748 = vmatprep.subr.mxu0 %v1970_v1 }
 0x7ca   :  { %1749 = vmatpush3.msra.mxu0 %v770_v27 }
 0x7cb   :  { %1750 = vmatprep.subr.mxu0 %v1970_v1 }
 0x7cc   :  { %1751 = vmatpush3.msra.mxu0 %v769_v28 }
 0x7cd   :  { %1752 = vmatprep.subr.mxu0 %v1970_v1 }
 0x7ce   :  { %1753 = vmatpush3.msra.mxu0 %v768_v29 }
 0x7cf   :  { %1754 = vmatprep.subr.mxu0 %v1970_v1 }
 0x7d0   :  { %1755 = vmatpush3.msra.mxu0 %v767_v30 }
 0x7d1   :  { %1756 = vmatprep.subr.mxu0 %v1970_v1 }
 0x7d2   :  { %1757 = vmatpush3.msra.mxu0 %v766_v31  ;;  %v2345_v31 = vld [vmem:[#allocation2] ss:$0 sm:$0xff] }
 0x7d3   :  { %1758 = vmatprep.subr.mxu0 %v1970_v1 }
 0x7d4   :  { %1759 = vmatpush3.msra.mxu0 %v765_v32 }
 0x7d5   :  { %1760 = vmatprep.subr.mxu0 %v1970_v1 }
 0x7d6   :  { %1761 = vmatpush3.msra.mxu0 %v764_v33 }
 0x7d7   :  { %1762 = vmatprep.subr.mxu0 %v1970_v1 }
 0x7d8   :  { %1763 = vmatpush3.msra.mxu0 %v763_v34 }
 0x7d9   :  { %1764 = vmatprep.subr.mxu0 %v1970_v1 }
 0x7da   :  { %1765 = vmatpush3.msra.mxu0 %v762_v35 }
 0x7db   :  { %1766 = vmatprep.subr.mxu0 %v1970_v1 }
 0x7dc   :  { %1767 = vmatpush3.msra.mxu0 %v761_v36 }
 0x7dd   :  { %1768 = vmatprep.subr.mxu0 %v1970_v1 }
 0x7de   :  { %1769 = vmatpush3.msra.mxu0 %v760_v37 }
 0x7df   :  { %1770 = vmatprep.subr.mxu0 %v1970_v1 }
 0x7e0   :  { %1771 = vmatpush3.msra.mxu0 %v759_v38 }
 0x7e1   :  { %1772 = vmatprep.subr.mxu0 %v1970_v1 }
 0x7e2   :  { %1773 = vmatpush3.msra.mxu0 %v758_v39  ;;  %v1271_v39 = vld [vmem:[%s2448_s15 + $0x78] sm:$0xff] }
 0x7e3   :  { %1830 = vmatprep.subr.mxu0 %v1970_v1 }
 0x883   :  { %v746_v41 = vpop.f32.mrf.mxu0 }
 0x884   :  { %v747_v43 = vadd.f32 %v746_v41, %v2148_v42  ;;  %v1270_v41 = vld [vmem:[%s2448_s15 + $0x70] sm:$0xff] }
 0x885   :  { %v1741_v44 = vpop.f32.mrf.mxu0 }
 0x886   :  { %v750_v45 = vmul.f32 %v2246_v16, %v747_v43  ;;  %v1010_v16 = vld [vmem:[#allocation6] sm:$0xff]  ;;  %v1267_v44 = vld [vmem:[%s2448_s15 + $0x58] sm:$0xff] }
 0x887   :  { %v1269_v43 = vld [vmem:[%s2448_s15 + $0x68] sm:$0xff] }
 0x888   :  { %v751_v46 = vadd.f32 %v750_v45, %v2231_v11  ;;  %v1015_v11 = vld [vmem:[#allocation6 + $0x28] sm:$0xff] }
 0x889   :  { %v1266_v45 = vld [vmem:[%s2448_s15 + $0x50] sm:$0xff] }
 0x88a   :  { %755 = vrot.lane.b32.xlu0 %v751_v46, %s1972_s17  ;;  %752 = vrot.lane.b32.xlu1 %v751_v46, %s1973_s18 }
 0x8fc   :  { %v753_v47 = vpop.permute.xlu1 %752  ;;  %v756_v49 = vpop.permute.xlu0 %755 }
 0x8fd   :  { %v754_v48 = vmax.f32 %v751_v46, %v753_v47  ;;  %v1265_v46 = vld [vmem:[%s2448_s15 + $0x48] sm:$0xff]  ;;  %v1264_v47 = vld [vmem:[%s2448_s15 + $0x40] sm:$0xff] }
 0x8ff   :  { %v757_v50 = vmax.f32 %v754_v48, %v756_v49  ;;  %v1263_v48 = vld [vmem:[%s2448_s15 + $0x38] sm:$0xff]  ;;  %v1262_v49 = vld [vmem:[%s2448_s15 + $0x30] sm:$0xff] }
 0x901   :  { %1775 = vmatmul.mubr.f32.vlgmr.msra.gmra.mxu0 %v757_v50  ;;  %v1261_v50 = vld [vmem:[%s2448_s15 + $0x28] sm:$0xff] }
 0x902   :  { %1836 = vmatprep.mubr.msk.f32.mxu0 %vm1974_vm9, %v1970_v1 }
 0x9c1   :  { %v2282_v51 = vpop.f32.mrf.mxu0 }
 0x9c2   :  { %v845_v52 = vmax.f32 %v2282_v51, 0.0 }
 0x9c3   :  { %v1776_v53 = vpop.f32.mrf.mxu0 }
 0x9c4   :  { %846 = vrot.lane.b32.xlu0 %v845_v52, %s1976_s2  ;;  %848 = vrot.lane.b32.xlu1 %v845_v52, %s1973_s18  ;;  %v1258_v53 = vld [vmem:[%s2448_s15 + $0x10] sm:$0xff] }
 0xa36   :  { %v849_v54 = vpop.permute.xlu1 %848  ;;  %v847_v55 = vpop.permute.xlu0 %846 }
 0xa37   :  { %1778 = vmatpush3.msra.mxu1 %v849_v54  ;;  %v1257_v54 = vld [vmem:[%s2448_s15 + $0x8] sm:$0xff] }
 0xa38   :  { %1779 = vmatprep.subr.mxu1 %v1970_v1 }
 0xa39   :  { %1780 = vmatpush3.msra.mxu1 %v845_v52  ;;  %v1259_v52 = vld [vmem:[%s2448_s15 + $0x18] sm:$0xff] }
 0xa3a   :  { %1781 = vmatprep.subr.mxu1 %v1970_v1 }
 0xa3b   :  { %1782 = vmatpush3.msra.mxu1 %v847_v55  ;;  %v1256_v55 = vld [vmem:[%s2448_s15] sm:$0xff] }
 0xa3c   :  { %1784 = vmatmul.mubr.msk.f32.vlgmr.msra.gmra.mxu1 %vm349_vm11, %v2140_v40  ;;  %1786 = vmatprep.subr.mxu1 %v1970_v1 }
 0xa3d   :  { %1792 = vmatprep.mubr.msk.f32.mxu1 %vm1974_vm9, %v1970_v1 }
 0xafc   :  { %v916_v57 = vpop.f32.mrf.mxu1 }
 0xafd   :  { %v917_v58 = vadd.f32 %v916_v57, %v2148_v42 }
 0xafe   :  { %v1785_v59 = vpop.f32.mrf.mxu1 }
 0xaff   :  { %v926_v60 = vmul.f32 %v2297_v56, %v917_v58 }
 0xb01   :  { %v927_v61 = vmax.f32 %v926_v60, 0.0 }
 0xb03   :  { %928 = vrot.lane.b32.xlu0 %v927_v61, %s1976_s2  ;;  %930 = vrot.lane.b32.xlu1 %v927_v61, %s1973_s18 }
 0xb75   :  { %v931_v62 = vpop.permute.xlu1 %930  ;;  %v929_v63 = vpop.permute.xlu0 %928 }
 0xb76   :  { %1787 = vmatpush3.msra.mxu1 %v931_v62 }
 0xb77   :  { %1788 = vmatprep.subr.mxu1 %v1970_v1 }
 0xb78   :  { %1789 = vmatpush3.msra.mxu1 %v927_v61  ;;  %v1374_v61 = vld [vmem:[%s2439_s6] sm:$0xff] }
 0xb79   :  { %1790 = vmatprep.subr.mxu1 %v1970_v1 }
 0xb7a   :  { %1791 = vmatpush3.msra.mxu1 %v929_v63 }
 0xb7b   :  { %1793 = vmatmul.mubr.msk.f32.vlgmr.msra.gmra.mxu1 %vm349_vm11, %v2140_v40  ;;  %1795 = vmatprep.subr.mxu1 %v1970_v1 }
 0xb7c   :  { %1827 = vmatprep.mubr.msk.f32.mxu1 %vm1974_vm9, %v1970_v1  ;;  %1796 = vmatpush3.msra.mxu1 %v1025_v0 }
 0xb7d   :  { %1797 = vmatprep.subr.mxu1 %v1970_v1 }
 0xb7e   :  { %1798 = vmatpush3.msra.mxu1 %v1024_v2 }
 0xb7f   :  { %1799 = vmatprep.subr.mxu1 %v1970_v1 }
 0xb80   :  { %1800 = vmatpush3.msra.mxu1 %v1023_v3 }
 0xb81   :  { %1801 = vmatprep.subr.mxu1 %v1970_v1 }
 0xb82   :  { %1802 = vmatpush3.msra.mxu1 %v1022_v4 }
 0xb83   :  { %1803 = vmatprep.subr.mxu1 %v1970_v1 }
 0xb84   :  { %1804 = vmatpush3.msra.mxu1 %v1021_v5 }
 0xb85   :  { %1805 = vmatprep.subr.mxu1 %v1970_v1 }
 0xb86   :  { %1806 = vmatpush3.msra.mxu1 %v1020_v6 }
 0xb87   :  { %1807 = vmatprep.subr.mxu1 %v1970_v1 }
 0xb88   :  { %1808 = vmatpush3.msra.mxu1 %v1019_v7 }
 0xb89   :  { %1809 = vmatprep.subr.mxu1 %v1970_v1 }
 0xb8a   :  { %1810 = vmatpush3.msra.mxu1 %v1018_v8 }
 0xb8b   :  { %1811 = vmatprep.subr.mxu1 %v1970_v1 }
 0xb8c   :  { %1812 = vmatpush3.msra.mxu1 %v1017_v9 }
 0xb8d   :  { %1813 = vmatprep.subr.mxu1 %v1970_v1 }
 0xb8e   :  { %1814 = vmatpush3.msra.mxu1 %v1016_v10 }
 0xb8f   :  { %1815 = vmatprep.subr.mxu1 %v1970_v1 }
 0xb90   :  { %1816 = vmatpush3.msra.mxu1 %v1015_v11 }
 0xb91   :  { %1817 = vmatprep.subr.mxu1 %v1970_v1 }
 0xb92   :  { %1818 = vmatpush3.msra.mxu1 %v1014_v12 }
 0xb93   :  { %1819 = vmatprep.subr.mxu1 %v1970_v1 }
 0xb94   :  { %1820 = vmatpush3.msra.mxu1 %v1013_v13 }
 0xb95   :  { %1821 = vmatprep.subr.mxu1 %v1970_v1 }
 0xb96   :  { %1822 = vmatpush3.msra.mxu1 %v1012_v14 }
 0xb97   :  { %1823 = vmatprep.subr.mxu1 %v1970_v1 }
 0xb98   :  { %1824 = vmatpush3.msra.mxu1 %v1011_v15 }
 0xb99   :  { %1825 = vmatprep.subr.mxu1 %v1970_v1 }
 0xb9a   :  { %1826 = vmatpush3.msra.mxu1 %v1010_v16 }
 0xb9b   :  { %1883 = vmatprep.subr.mxu1 %v1970_v1 }
 0xc3b   :  { %v998_v17 = vpop.f32.mrf.mxu1 }
 0xc3c   :  { %v999_v18 = vadd.f32 %v998_v17, %v2148_v42 }
 0xc3d   :  { %v1794_v19 = vpop.f32.mrf.mxu1 }
 0xc3e   :  { %v1002_v20 = vmul.f32 %v2297_v56, %v999_v18 }
 0xc40   :  { %v1003_v21 = vadd.f32 %v1002_v20, %v2282_v51  ;;  %v1260_v51 = vld [vmem:[%s2448_s15 + $0x20] sm:$0xff] }
 0xc42   :  { %1007 = vrot.lane.b32.xlu0 %v1003_v21, %s1972_s17  ;;  %1004 = vrot.lane.b32.xlu1 %v1003_v21, %s1973_s18 }
 0xcb4   :  { %v1005_v22 = vpop.permute.xlu1 %1004  ;;  %v1008_v24 = vpop.permute.xlu0 %1007 }
 0xcb5   :  { %v1006_v23 = vmax.f32 %v1003_v21, %v1005_v22 }
 0xcb7   :  { %v1009_v25 = vmax.f32 %v1006_v23, %v1008_v24 }
 0xcb9   :  { %1828 = vmatmul.mubr.f32.vlgmr.msra.gmra.mxu1 %v1009_v25 }
 0xcba   :  { %1885 = vmatprep.mubr.msk.f32.mxu1 %vm1974_vm9, %v1970_v1  ;;  %1884 = vmatpush3.msra.mxu1 %v1374_v61 }
 0xd79   :  { %v2333_v26 = vpop.f32.mrf.mxu1 }
 0xd7a   :  { %v1097_v27 = vmax.f32 %v2333_v26, 0.0 }
 0xd7b   :  { %v1829_v28 = vpop.f32.mrf.mxu1 }
 0xd7c   :  { %1098 = vrot.lane.b32.xlu0 %v1097_v27, %s1976_s2  ;;  %1100 = vrot.lane.b32.xlu1 %v1097_v27, %s1973_s18 }
 0xdee   :  { %v1101_v29 = vpop.permute.xlu1 %1100  ;;  %v1099_v30 = vpop.permute.xlu0 %1098 }
 0xdef   :  { %1831 = vmatpush3.msra.mxu0 %v1101_v29 }
 0xdf0   :  { %1832 = vmatprep.subr.mxu0 %v1970_v1 }
 0xdf1   :  { %1833 = vmatpush3.msra.mxu0 %v1097_v27 }
 0xdf2   :  { %1834 = vmatprep.subr.mxu0 %v1970_v1 }
 0xdf3   :  { %1835 = vmatpush3.msra.mxu0 %v1099_v30 }
 0xdf4   :  { %1837 = vmatmul.mubr.msk.f32.vlgmr.msra.gmra.mxu0 %vm349_vm11, %v2140_v40  ;;  %1839 = vmatprep.subr.mxu0 %v1970_v1 }
 0xdf5   :  { %1845 = vmatprep.mubr.msk.f32.mxu0 %vm1974_vm9, %v1970_v1 }
 0xeb4   :  { %v1168_v32 = vpop.f32.mrf.mxu0 }
 0xeb5   :  { %v1169_v33 = vadd.f32 %v1168_v32, %v2148_v42 }
 0xeb6   :  { %v1838_v34 = vpop.f32.mrf.mxu0 }
 0xeb7   :  { %v1178_v35 = vmul.f32 %v2345_v31, %v1169_v33 }
 0xeb9   :  { %v1179_v36 = vmax.f32 %v1178_v35, 0.0 }
 0xebb   :  { %1180 = vrot.lane.b32.xlu0 %v1179_v36, %s1976_s2  ;;  %1182 = vrot.lane.b32.xlu1 %v1179_v36, %s1973_s18 }
 0xf2d   :  { %v1183_v37 = vpop.permute.xlu1 %1182  ;;  %v1181_v38 = vpop.permute.xlu0 %1180 }
 0xf2e   :  { %1840 = vmatpush3.msra.mxu0 %v1183_v37 }
 0xf2f   :  { %1841 = vmatprep.subr.mxu0 %v1970_v1 }
 0xf30   :  { %1842 = vmatpush3.msra.mxu0 %v1179_v36 }
 0xf31   :  { %1843 = vmatprep.subr.mxu0 %v1970_v1 }
 0xf32   :  { %1844 = vmatpush3.msra.mxu0 %v1181_v38 }
 0xf33   :  { %1846 = vmatmul.mubr.msk.f32.vlgmr.msra.gmra.mxu0 %vm349_vm11, %v2140_v40  ;;  %1848 = vmatprep.subr.mxu0 %v1970_v1  ;;  %v1268_v40 = vld [vmem:[%s2448_s15 + $0x60] sm:$0xff] }
 0xf34   :  { %1849 = vmatpush3.msra.mxu0 %v1271_v39  ;;  %1880 = vmatprep.mubr.msk.f32.mxu0 %vm1974_vm9, %v1970_v1 }
 0xf35   :  { %1850 = vmatprep.subr.mxu0 %v1970_v1 }
 0xf36   :  { %1851 = vmatpush3.msra.mxu0 %v1270_v41 }
 0xf37   :  { %1852 = vmatprep.subr.mxu0 %v1970_v1 }
 0xf38   :  { %1853 = vmatpush3.msra.mxu0 %v1269_v43 }
 0xf39   :  { %1854 = vmatprep.subr.mxu0 %v1970_v1 }
 0xf3a   :  { %1855 = vmatpush3.msra.mxu0 %v1268_v40 }
 0xf3b   :  { %1856 = vmatprep.subr.mxu0 %v1970_v1 }
 0xf3c   :  { %1857 = vmatpush3.msra.mxu0 %v1267_v44 }
 0xf3d   :  { %1858 = vmatprep.subr.mxu0 %v1970_v1 }
 0xf3e   :  { %1859 = vmatpush3.msra.mxu0 %v1266_v45 }
 0xf3f   :  { %1860 = vmatprep.subr.mxu0 %v1970_v1 }
 0xf40   :  { %1861 = vmatpush3.msra.mxu0 %v1265_v46 }
 0xf41   :  { %1862 = vmatprep.subr.mxu0 %v1970_v1 }
 0xf42   :  { %1863 = vmatpush3.msra.mxu0 %v1264_v47 }
 0xf43   :  { %1864 = vmatprep.subr.mxu0 %v1970_v1 }
 0xf44   :  { %1865 = vmatpush3.msra.mxu0 %v1263_v48 }
 0xf45   :  { %1866 = vmatprep.subr.mxu0 %v1970_v1 }
 0xf46   :  { %1867 = vmatpush3.msra.mxu0 %v1262_v49 }
 0xf47   :  { %1868 = vmatprep.subr.mxu0 %v1970_v1 }
 0xf48   :  { %1869 = vmatpush3.msra.mxu0 %v1261_v50 }
 0xf49   :  { %1870 = vmatprep.subr.mxu0 %v1970_v1 }
 0xf4a   :  { %1871 = vmatpush3.msra.mxu0 %v1260_v51 }
 0xf4b   :  { %1872 = vmatprep.subr.mxu0 %v1970_v1 }
 0xf4c   :  { %1873 = vmatpush3.msra.mxu0 %v1259_v52 }
 0xf4d   :  { %1874 = vmatprep.subr.mxu0 %v1970_v1 }
 0xf4e   :  { %1875 = vmatpush3.msra.mxu0 %v1258_v53 }
 0xf4f   :  { %1876 = vmatprep.subr.mxu0 %v1970_v1 }
 0xf50   :  { %1877 = vmatpush3.msra.mxu0 %v1257_v54 }
 0xf51   :  { %1878 = vmatprep.subr.mxu0 %v1970_v1 }
 0xf52   :  { %1879 = vmatpush3.msra.mxu0 %v1256_v55 }
 0xff3   :  { %v1250_v56 = vpop.f32.mrf.mxu0 }
 0xff4   :  { %v1251_v57 = vadd.f32 %v1250_v56, %v2148_v42  ;;  %v1496_v42 = vld [vmem:[%s2440_s7] ss:$0 sm:$0xff] }
 0xff5   :  { %v1847_v58 = vpop.f32.mrf.mxu0 }
 0xff6   :  { %v1254_v59 = vmul.f32 %v2345_v31, %v1251_v57 }
 0xff8   :  { %v1255_v60 = vadd.f32 %v1254_v59, %v2333_v26 }
 0xffa   :  { %1881 = vmatmul.mubr.f32.vlgmr.msra.gmra.mxu0 %v1255_v60 }
0x10ba   :  { %v1338_v1 = vpop.f32.mrf.mxu0 }
0x10bb   :  { %1342 = vxpose.xlu1.b32.start.end [1/1] (short) (narrow) %v1338_v1, 8 }
0x10bc   :  { %v1882_v62 = vpop.f32.mrf.mxu0 }
0x1137   :  { %v1358_v63 = vpop.trf.xlu1 }
0x1138   :  { %1886 = vmatmul.mubr.msk.f32.vlgmr.msra.gmra.mxu1 %vm1382_vm12, %v1358_v63 }
0x11f8   :  { %v1452_v0 = vpop.f32.mrf.mxu1 }
0x11f9   :  { %v1453_v2 = vadd.f32 %v1496_v42, %v1452_v0 }
0x11fa   :  { %v1887_v3 = vpop.f32.mrf.mxu1 }
0x11fb   :  { %1457 = vst.msk [vmem:[%s2449_s16] sm:$0xff] %vm1456_vm13, %v1453_v2 }
0x11fc   :  { %1462 = vsyncpa [#allocation3], 1 }
0x11fd   :  { %1463 = vsyncpa [#allocation5], 1 }

</bundles_post_ra>
